<compile_context>
chip_gen: v7x
topology: tpu7x:2x2x1
jax: 0.10.0
libtpu: 0.0.40
codegen_flags: <defaults>
</compile_context>

<pallas_src>
import functools
import math

import jax
import jax.numpy as jnp
from jax.experimental import pallas as pl
from jax.experimental.pallas import tpu as pltpu


LANE = 128          # lane width / MXU tile edge
SUBLANE = 8         # f32 sublane granularity


def _round_up(x, m):
    return ((x + m - 1) // m) * m


# ----------------------------------------------------------------------------
# Pallas kernel: fused 3-layer MLP (Linear -> tanh -> Linear -> tanh -> Linear)
# with optional "actor" head (continuous: norm-scaled sigmoid, discrete: softmax).
# Operates on one batch tile; all feature dims are pre-padded to 128 lanes.
# ----------------------------------------------------------------------------
def _mlp_kernel(x_ref, w1_ref, b1_ref, w2_ref, b2_ref, w3_ref, b3_ref, o_ref,
                *, actor: bool, discrete: bool, out_dim: int):
    x = x_ref[...]                                         # bf16 [TB, IN_PAD]

    # Layer 1: bf16 matmul, f32 accumulate, f32 bias + tanh.
    h = jnp.dot(x, w1_ref[...], preferred_element_type=jnp.float32) + b1_ref[...]
    h = jnp.tanh(h)                                        # activation_fn = nn.Tanh

    # Layer 2.
    h = jnp.dot(h.astype(jnp.bfloat16), w2_ref[...],
                preferred_element_type=jnp.float32) + b2_ref[...]
    h = jnp.tanh(h)

    # Layer 3 (output head). Padded output columns are exactly 0
    # (zero weight columns, zero bias) by construction.
    out = jnp.dot(h.astype(jnp.bfloat16), w3_ref[...],
                  preferred_element_type=jnp.float32) + b3_ref[...]

    if actor:
        if discrete:
            # torch.softmax(output, dim=1), masked to the real out_dim columns.
            lane = jax.lax.broadcasted_iota(jnp.int32, out.shape, 1)
            valid = lane < out_dim
            neg = jnp.where(valid, out, jnp.float32(-1e30))
            m = jnp.max(neg, axis=1, keepdims=True)
            e = jnp.exp(neg - m)                           # padded lanes -> exp(-huge) = 0
            denom = jnp.sum(e, axis=1, keepdims=True)
            out = e * pl.reciprocal(denom, approx=True)
        else:
            # norm = (||output||_2 over last dim + 1e-8).unsqueeze(-1)
            # output = output / norm * 2.5 * sigmoid(norm)
            # Padded columns are zero so no mask is needed for the reduction.
            ssq = jnp.sum(out * out, axis=-1, keepdims=True)
            norm = jnp.sqrt(ssq) + 1e-8
            out = out * pl.reciprocal(norm, approx=True) * 2.5 * jax.nn.sigmoid(norm)

    o_ref[...] = out.astype(o_ref.dtype)


# ----------------------------------------------------------------------------
# Wrapper: pads params / inputs to lane-dense shapes, tiles the batch axis.
# ----------------------------------------------------------------------------
def pack_params_for_kernel(params):
    """Zero-pad every feature dim to a multiple of 128; weights -> bf16, biases -> f32."""
    w1, b1, w2, b2, w3, b3 = params

    def pad_w(w):
        r, c = w.shape
        wp = jnp.pad(w, ((0, _round_up(r, LANE) - r), (0, _round_up(c, LANE) - c)))
        return wp.astype(jnp.bfloat16)

    def pad_b(b):
        c = b.shape[1]
        return jnp.pad(b, ((0, 0), (0, _round_up(c, LANE) - c))).astype(jnp.float32)

    return (pad_w(w1), pad_b(b1), pad_w(w2), pad_b(b2), pad_w(w3), pad_b(b3))


def mlp_forward(x, params, *, actor=False, discrete=False, block_batch=128):
    """Runs the fused MLP Pallas kernel.  `params` = raw (w1,b1,w2,b2,w3,b3)."""
    w1p, b1p, w2p, b2p, w3p, b3p = pack_params_for_kernel(params)
    out_dim = params[4].shape[1]                 # real (unpadded) output width

    batch, in_dim = x.shape
    in_pad = w1p.shape[0]
    h1_pad = w1p.shape[1]
    h2_pad = w2p.shape[1]
    out_pad = w3p.shape[1]

    # Batch tiling: pad batch to a multiple of the tile size, tile only that axis.
    tb = min(block_batch, _round_up(batch, SUBLANE))
    b_pad = _round_up(batch, tb)
    x_p = jnp.pad(x, ((0, b_pad - batch), (0, in_pad - in_dim))).astype(jnp.bfloat16)

    kernel = functools.partial(_mlp_kernel, actor=actor, discrete=discrete,
                               out_dim=out_dim)

    out_padded = pl.pallas_call(
        kernel,
        grid=(b_pad // tb,),
        in_specs=[
            pl.BlockSpec((tb, in_pad), lambda i: (i, 0)),        # x: tiled over batch
            pl.BlockSpec((in_pad, h1_pad), lambda i: (0, 0)),    # weights/biases stay
            pl.BlockSpec((1, h1_pad), lambda i: (0, 0)),         # VMEM-resident across
            pl.BlockSpec((h1_pad, h2_pad), lambda i: (0, 0)),    # grid steps
            pl.BlockSpec((1, h2_pad), lambda i: (0, 0)),
            pl.BlockSpec((h2_pad, out_pad), lambda i: (0, 0)),
            pl.BlockSpec((1, out_pad), lambda i: (0, 0)),
        ],
        out_specs=pl.BlockSpec((tb, out_pad), lambda i: (i, 0)),
        out_shape=jax.ShapeDtypeStruct((b_pad, out_pad), jnp.float32),
        compiler_params=pltpu.CompilerParams(
            dimension_semantics=("parallel",)),                  # megacore on v7x
    )(x_p, w1p, b1p, w2p, b2p, w3p, b3p)

    return out_padded[:batch, :out_dim]


# ----------------------------------------------------------------------------
# Deterministic parameter init (mirrors MLP.__init__):
#   nn.Linear weights -> orthogonal_ with gain sqrt(2);  biases -> PyTorch
#   default uniform(-1/sqrt(fan_in), 1/sqrt(fan_in)).
# ----------------------------------------------------------------------------
def _orthogonal(key, fan_in, fan_out, gain):
    rows, cols = fan_out, fan_in
    a = jax.random.normal(key, (max(rows, cols), min(rows, cols)), jnp.float32)
    q, r = jnp.linalg.qr(a)
    q = q * jnp.sign(jnp.diagonal(r))[None, :]
    if rows < cols:
        q = q.T
    w_torch = gain * q[:rows, :cols]          # [out, in] (PyTorch layout)
    return w_torch.T.astype(jnp.float32)      # [in, out] (kernel layout)


def init_mlp_params(key, input_size, shape, output_size):
    dims = [input_size] + list(shape) + [output_size]
    params = []
    for i in range(len(dims) - 1):
        key, kw, kb = jax.random.split(key, 3)
        fan_in, fan_out = dims[i], dims[i + 1]
        w = _orthogonal(kw, fan_in, fan_out, math.sqrt(2.0))
        bound = 1.0 / math.sqrt(fan_in)
        b = jax.random.uniform(kb, (1, fan_out), jnp.float32, -bound, bound)
        params += [w, b]
    return tuple(params)


# ----------------------------------------------------------------------------
# Pure-JAX f32 reference for verification.
# ----------------------------------------------------------------------------
def mlp_reference(x, params, *, actor=False, discrete=False):
    w1, b1, w2, b2, w3, b3 = params
    h = jnp.tanh(x @ w1 + b1)
    h = jnp.tanh(h @ w2 + b2)
    out = h @ w3 + b3
    if actor:
        if discrete:
            out = jax.nn.softmax(out, axis=1)
        else:
            norm = jnp.linalg.norm(out, axis=-1, keepdims=True) + 1e-8
            out = (out / norm) * 2.5 * jax.nn.sigmoid(norm)
    return out


if __name__ == "__main__":
    # Shapes consistent with the module: MLP(shape=[64, 64], nn.Tanh, 32, 12).
    # batch=200 exercises multi-tile batch tiling (2 grid steps of 128 rows).
    batch, input_size, hidden, output_size = 200, 32, [64, 64], 12

    key = jax.random.PRNGKey(0)
    key, kx = jax.random.split(key)
    x = jax.random.normal(kx, (batch, input_size), jnp.float32)
    params = init_mlp_params(key, input_size, hidden, output_size)

    # bf16 MXU inputs + approx reciprocal loosen tolerance vs the f32 reference.
    TOL = dict(atol=5e-2, rtol=5e-2)

    # Critic path (actor=False, default forward)
    out = jax.block_until_ready(mlp_forward(x, params))
    ref = mlp_reference(x, params)
    assert out.shape == ref.shape, "critic shape mismatch"
    assert jnp.allclose(out, ref, **TOL), "critic mismatch"

    # Actor path, continuous (discrete=False)
    out_a = jax.block_until_ready(mlp_forward(x, params, actor=True, discrete=False))
    ref_a = mlp_reference(x, params, actor=True, discrete=False)
    assert jnp.allclose(out_a, ref_a, **TOL), "actor(cont) mismatch"

    # Actor path, discrete (softmax over dim=1)
    out_d = jax.block_until_ready(mlp_forward(x, params, actor=True, discrete=True))
    ref_d = mlp_reference(x, params, actor=True, discrete=True)
    assert jnp.allclose(out_d, ref_d, **TOL), "actor(disc) mismatch"
    assert jnp.allclose(jnp.sum(out_d, axis=1), 1.0, atol=1e-2), "softmax not normalized"

    print("KERNEL_OK")
</pallas_src>

<mosaic_0001>
module attributes {stable_mosaic.version = 11 : i64} {
  func.func @_mlp_kernel(%arg0: i32, %arg1: memref<128x128xbf16, #tpu.memory_space<vmem>>, %arg2: memref<128x128xbf16, #tpu.memory_space<vmem>>, %arg3: memref<1x128xf32, #tpu.memory_space<vmem>>, %arg4: memref<128x128xbf16, #tpu.memory_space<vmem>>, %arg5: memref<1x128xf32, #tpu.memory_space<vmem>>, %arg6: memref<128x128xbf16, #tpu.memory_space<vmem>>, %arg7: memref<1x128xf32, #tpu.memory_space<vmem>>, %arg8: memref<128x128xf32, #tpu.memory_space<vmem>>) attributes {dimension_semantics = [#tpu.dimension_semantics<parallel>], iteration_bounds = array<i64: 2>, scalar_prefetch = 0 : i64, scratch_operands = 0 : i64, tpu.core_type = #tpu.core_type<tc>, window_params = [{transform_indices = @transform_0, window_bounds = array<i64: 128, 128>}, {pipeline_mode = #tpu.pipeline_mode<synchronous>, transform_indices = @transform_1, window_bounds = array<i64: 128, 128>}, {pipeline_mode = #tpu.pipeline_mode<synchronous>, transform_indices = @transform_2, window_bounds = array<i64: 1, 128>}, {pipeline_mode = #tpu.pipeline_mode<synchronous>, transform_indices = @transform_3, window_bounds = array<i64: 128, 128>}, {pipeline_mode = #tpu.pipeline_mode<synchronous>, transform_indices = @transform_4, window_bounds = array<i64: 1, 128>}, {pipeline_mode = #tpu.pipeline_mode<synchronous>, transform_indices = @transform_5, window_bounds = array<i64: 128, 128>}, {pipeline_mode = #tpu.pipeline_mode<synchronous>, transform_indices = @transform_6, window_bounds = array<i64: 1, 128>}, {transform_indices = @transform_7, window_bounds = array<i64: 128, 128>}]} {
    %c0 = arith.constant 0 : index
    %c0_0 = arith.constant 0 : index
    %0 = vector.load %arg1[%c0, %c0_0] : memref<128x128xbf16, #tpu.memory_space<vmem>>, vector<128x128xbf16>
    %c0_1 = arith.constant 0 : index
    %c0_2 = arith.constant 0 : index
    %1 = vector.load %arg2[%c0_1, %c0_2] : memref<128x128xbf16, #tpu.memory_space<vmem>>, vector<128x128xbf16>
    %cst = arith.constant dense<0.000000e+00> : vector<128x128xf32>
    %2 = tpu.matmul %0, %1, %cst {dimension_numbers = #tpu.dot_dimension_numbers<[1], [0], [0], [1], [0, 0, 1, 1], [], []>} : vector<128x128xbf16>, vector<128x128xbf16>, vector<128x128xf32> -> vector<128x128xf32>
    %c0_3 = arith.constant 0 : index
    %c0_4 = arith.constant 0 : index
    %3 = vector.load %arg3[%c0_3, %c0_4] : memref<1x128xf32, #tpu.memory_space<vmem>>, vector<1x128xf32>
    %4 = vector.broadcast %3 : vector<1x128xf32> to vector<128x128xf32>
    %5 = arith.addf %2, %4 : vector<128x128xf32>
    %6 = math.tanh %5 : vector<128x128xf32>
    %7 = arith.truncf %6 : vector<128x128xf32> to vector<128x128xbf16>
    %c0_5 = arith.constant 0 : index
    %c0_6 = arith.constant 0 : index
    %8 = vector.load %arg4[%c0_5, %c0_6] : memref<128x128xbf16, #tpu.memory_space<vmem>>, vector<128x128xbf16>
    %cst_7 = arith.constant dense<0.000000e+00> : vector<128x128xf32>
    %9 = tpu.matmul %7, %8, %cst_7 {dimension_numbers = #tpu.dot_dimension_numbers<[1], [0], [0], [1], [0, 0, 1, 1], [], []>} : vector<128x128xbf16>, vector<128x128xbf16>, vector<128x128xf32> -> vector<128x128xf32>
    %c0_8 = arith.constant 0 : index
    %c0_9 = arith.constant 0 : index
    %10 = vector.load %arg5[%c0_8, %c0_9] : memref<1x128xf32, #tpu.memory_space<vmem>>, vector<1x128xf32>
    %11 = vector.broadcast %10 : vector<1x128xf32> to vector<128x128xf32>
    %12 = arith.addf %9, %11 : vector<128x128xf32>
    %13 = math.tanh %12 : vector<128x128xf32>
    %14 = arith.truncf %13 : vector<128x128xf32> to vector<128x128xbf16>
    %c0_10 = arith.constant 0 : index
    %c0_11 = arith.constant 0 : index
    %15 = vector.load %arg6[%c0_10, %c0_11] : memref<128x128xbf16, #tpu.memory_space<vmem>>, vector<128x128xbf16>
    %cst_12 = arith.constant dense<0.000000e+00> : vector<128x128xf32>
    %16 = tpu.matmul %14, %15, %cst_12 {dimension_numbers = #tpu.dot_dimension_numbers<[1], [0], [0], [1], [0, 0, 1, 1], [], []>} : vector<128x128xbf16>, vector<128x128xbf16>, vector<128x128xf32> -> vector<128x128xf32>
    %c0_13 = arith.constant 0 : index
    %c0_14 = arith.constant 0 : index
    %17 = vector.load %arg7[%c0_13, %c0_14] : memref<1x128xf32, #tpu.memory_space<vmem>>, vector<1x128xf32>
    %18 = vector.broadcast %17 : vector<1x128xf32> to vector<128x128xf32>
    %19 = arith.addf %16, %18 : vector<128x128xf32>
    %c0_15 = arith.constant 0 : index
    %c0_16 = arith.constant 0 : index
    %20 = vector.load %arg8[%c0_15, %c0_16] : memref<128x128xf32, #tpu.memory_space<vmem>>, vector<128x128xf32>
    tpu.vector_store %arg8[%c0_15, %c0_16], %19 {strides = array<i32>} : memref<128x128xf32, #tpu.memory_space<vmem>>, vector<128x128xf32>,
    return
  }
  func.func @transform_0(%arg0: i32) -> (i32, i32) {
    %c0_i32 = arith.constant 0 : i32
    %c0_i32_0 = arith.constant 0 : i32
    return %arg0, %c0_i32 : i32, i32
  }
  func.func @transform_1(%arg0: i32) -> (i32, i32) {
    %c0_i32 = arith.constant 0 : i32
    %c0_i32_0 = arith.constant 0 : i32
    %c0_i32_1 = arith.constant 0 : i32
    return %c0_i32, %c0_i32_0 : i32, i32
  }
  func.func @transform_2(%arg0: i32) -> (i32, i32) {
    %c0_i32 = arith.constant 0 : i32
    %c0_i32_0 = arith.constant 0 : i32
    %c0_i32_1 = arith.constant 0 : i32
    return %c0_i32, %c0_i32_0 : i32, i32
  }
  func.func @transform_3(%arg0: i32) -> (i32, i32) {
    %c0_i32 = arith.constant 0 : i32
    %c0_i32_0 = arith.constant 0 : i32
    %c0_i32_1 = arith.constant 0 : i32
    return %c0_i32, %c0_i32_0 : i32, i32
  }
  func.func @transform_4(%arg0: i32) -> (i32, i32) {
    %c0_i32 = arith.constant 0 : i32
    %c0_i32_0 = arith.constant 0 : i32
    %c0_i32_1 = arith.constant 0 : i32
    return %c0_i32, %c0_i32_0 : i32, i32
  }
  func.func @transform_5(%arg0: i32) -> (i32, i32) {
    %c0_i32 = arith.constant 0 : i32
    %c0_i32_0 = arith.constant 0 : i32
    %c0_i32_1 = arith.constant 0 : i32
    return %c0_i32, %c0_i32_0 : i32, i32
  }
  func.func @transform_6(%arg0: i32) -> (i32, i32) {
    %c0_i32 = arith.constant 0 : i32
    %c0_i32_0 = arith.constant 0 : i32
    %c0_i32_1 = arith.constant 0 : i32
    return %c0_i32, %c0_i32_0 : i32, i32
  }
  func.func @transform_7(%arg0: i32) -> (i32, i32) {
    %c0_i32 = arith.constant 0 : i32
    %c0_i32_0 = arith.constant 0 : i32
    return %arg0, %c0_i32 : i32, i32
  }
}

</mosaic_0001>

<bundles_post_ra>
// kernel: tpu_custom_call.1
= control target key start
LH: loop header
LB: loop body
LE: loop exit
PB: predicated region body
PF: predicated region fallthrough
CT: control target
= control target key end

     0   :  { %12 = vsyncpa [#allocation3], 0  ;;  %s2065_s0 = inlined_call_operand.hbm [shape: bf16[256,128], index: 0, kind: input, shape index: {}]   ;;  %s2066_s1 = inlined_call_operand.hbm [shape: bf16[128,128], index: 1, kind: input, shape index: {}]   ;;  %s2067_s2 = inlined_call_operand.vmem [shape: f32[1,128], index: 2, kind: input, shape index: {}]   ;;  %s2068_s3 = inlined_call_operand.hbm [shape: bf16[128,128], index: 3, kind: input, shape index: {}]   ;;  %s2069_s4 = inlined_call_operand.vmem [shape: f32[1,128], index: 4, kind: input, shape index: {}]   ;;  %s2070_s5 = inlined_call_operand.hbm [shape: bf16[128,128], index: 5, kind: input, shape index: {}]   ;;  %s2071_s6 = inlined_call_operand.vmem [shape: f32[1,128], index: 6, kind: input, shape index: {}]   ;;  %s2072_s7 = inlined_call_operand.hbm [shape: f32[256,128], index: 7, kind: output, shape index: {}]  }
   0x1   :  { %14 = vsyncpa [#allocation3 + $0x1], 0 }
   0x2   :  { %15 = vsyncpa [#allocation6], 0 }
   0x3   :  { %16 = vsyncpa [#allocation9], 0 }
   0x4   :  { %17 = vsyncpa [#allocation4], 0 }
   0x5   :  { %19 = vsyncpa [#allocation4 + $0x1], 0  ;;  %s1725_s24 = smov 0   ;;  %s1727_s25 = smov 0  }
   0x6   :  { %s1729_s26 = smov 0   ;;  %s1731_s27 = smov 0  }
   0x7 LB: > { %s1746_s28 = sadd.s32 4294967295, %s1674_s27   ;;  %s1092_s29 = sadd.s32 4294967294, %s1674_s27   ;;  %s1674_s27 = sphi %s1731_s27, %s2098_s27   ;;  %s1670_s26 = sphi %s1729_s26, %s2097_s26   ;;  %s1666_s25 = sphi %s1727_s25, %s2096_s25   ;;  %s1662_s24 = sphi %s1725_s24, %s2095_s24  }
   0x8   : > { %p45_p0 = scmp.ne.s32.totalorder %s1666_s25, %s1662_s24  ;;  %p2073_p1 = scmp.eq.s32.totalorder %s1746_s28, 0 }
   0x9   : > { %p201_p3 = scmp.eq.s32.totalorder %s1092_s29, 1  ;;  %p1093_p5 = scmp.ge.s32.totalorder %s1674_s27, 1 }
   0xa   : > { %p1755_p4 = por %p2073_p1, %p45_p0  ;;  %p208_p7 = scmp.lt.s32.totalorder %s1674_s27, 3 }
   0xb   : > { %p1760_p6 = por %p201_p3, %p45_p0  ;;  %s1676_s10 = smov [#allocation5]  }
   0xc   : > { %s2077_s30 = scalar_select %p1755_p4, 1, 0 }
   0xd   : > { %s2078_s8 = scalar_select %p1760_p6, 1, 0 }
   0xe   : > { %p1765_p8 = pnand %p1093_p5, %p208_p7  ;;  %s220_s11 = sshll.u32 %s1676_s10, 4  ;;  %s1769_s11 = int_to_ptr.vmem [resolvable:$true] %s220_s11 }
   0xf   : > { %2079 = sst [smem:[#allocation15_spill]] %s2078_s8  ;;  %s1677_s13 = smov [#allocation7]  }
  0x10   : > { %s2080_s9 = scalar_select %p1765_p8, 1, 0 }
  0x11   : > { %p1325_p9 = pneg %p1765_p8  ;;  %s236_s14 = sshll.u32 %s1677_s13, 4  ;;  %s1780_s14 = int_to_ptr.vmem [resolvable:$true] %s236_s14 }
  0x12   : > { %s1678_s15 = smov [#allocation8]   ;;  %s1486_s19 = scalar_lea.hbm %s2066_s1, 1024 }
  0x13   : > { %p1776_p11 = pnand %p1325_p9, %p2073_p1  ;;  %s1782_s16 = sshll.u32 %s1678_s15, 4  ;;  %s253_s16 = int_to_ptr.vmem [resolvable:$true] %s1782_s16 }
  0x14   : > { %p1487_p12 = scmp.ne.s32.totalorder %s2066_s1, %s1486_s19  ;;  %p1493_p5 = scmp.lt.u32.totalorder %s1486_s19, %s2066_s1 }
  0x15   : > { %p1792_p13 = pneg %p1776_p11 }
  0x17   : > { %p1489_p0 = pnand %p1792_p13, %p1487_p12 }
  0x19   : > { %p1490_p3 = pneg %p1489_p0 }
  0x1b   : > { %p1495_p7 = pnand %p1493_p5, %p1490_p3 }
  0x1d   : > { %1498 = shalt.err (!%p1495_p7)
}
  0x1e   : > { %s1499_s10 = scalar_lea.vmem %s1769_s11, 1024  ;;  %p1507_p2 = scmp.lt.s32.totalorder %s1769_s11, %s1769_s11 }
  0x1f   : > { %p1500_p9 = scmp.ne.s32.totalorder %s1769_s11, %s1499_s10  ;;  %p1508_p6 = scmp.lt.s32.totalorder %s1499_s10, %s1499_s10 }
  0x21   : > { %p1502_p10 = pnand %p1500_p9, %p1792_p13  ;;  %p1509_p12 = por %p1508_p6, %p1507_p2 }
  0x23   : > { %p1503_p1 = pneg %p1502_p10 }
  0x25   : > { %p1510_p0 = pnand %p1509_p12, %p1503_p1 }
  0x27   : > { %1513 = shalt.err (!%p1510_p0)
}
  0x28   : > { %s1679_s13 = smov 64   ;;  %s1680_s15 = smov 4  }
  0x29   : > { %1328 = dma.hbm_to_vmem [thread:$0]  (!%p1776_p11), %s2066_s1, 1024, %s1769_s11, [#allocation6], %s1679_s13, %s1679_s13, %s1680_s15  }
  0x2a   : > { %s1514_s21 = scalar_lea.hbm %s2068_s3, 1024 }
  0x2b   : > { %p1515_p1 = scmp.ne.s32.totalorder %s2068_s3, %s1514_s21  ;;  %p1521_p10 = scmp.lt.u32.totalorder %s1514_s21, %s2068_s3 }
  0x2d   : > { %p1517_p2 = pnand %p1515_p1, %p1792_p13 }
  0x2f   : > { %p1518_p6 = pneg %p1517_p2 }
  0x31   : > { %p1523_p3 = pnand %p1521_p10, %p1518_p6 }
  0x33   : > { %1526 = shalt.err (!%p1523_p3)
}
  0x34   : > { %s1527_s11 = scalar_lea.vmem %s1780_s14, 1024  ;;  %p1535_p12 = scmp.lt.s32.totalorder %s1780_s14, %s1780_s14 }
  0x35   : > { %p1528_p5 = scmp.ne.s32.totalorder %s1780_s14, %s1527_s11  ;;  %p1536_p0 = scmp.lt.s32.totalorder %s1527_s11, %s1527_s11 }
  0x37   : > { %p1530_p7 = pnand %p1528_p5, %p1792_p13  ;;  %p1537_p1 = por %p1536_p0, %p1535_p12 }
  0x39   : > { %p1531_p9 = pneg %p1530_p7 }
  0x3b   : > { %p1538_p2 = pnand %p1537_p1, %p1531_p9 }
  0x3d   : > { %1541 = shalt.err (!%p1538_p2)
}
  0x3e   : > { %1331 = dma.hbm_to_vmem [thread:$0]  (!%p1776_p11), %s2068_s3, 1024, %s1780_s14, [#allocation6], %s1679_s13, %s1679_s13, %s1680_s15  }
  0x3f   : > { %s1542_s20 = scalar_lea.hbm %s2070_s5, 1024 }
  0x40   : > { %p1543_p6 = scmp.ne.s32.totalorder %s2070_s5, %s1542_s20  ;;  %p1549_p5 = scmp.lt.u32.totalorder %s1542_s20, %s2070_s5 }
  0x42   : > { %p1545_p10 = pnand %p1543_p6, %p1792_p13 }
  0x44   : > { %p1546_p3 = pneg %p1545_p10 }
  0x46   : > { %p1551_p7 = pnand %p1549_p5, %p1546_p3 }
  0x48   : > { %1554 = shalt.err (!%p1551_p7)
}
  0x49   : > { %s1555_s11 = scalar_lea.vmem %s253_s16, 1024  ;;  %p1563_p1 = scmp.lt.s32.totalorder %s253_s16, %s253_s16 }
  0x4a   : > { %p1556_p9 = scmp.ne.s32.totalorder %s253_s16, %s1555_s11  ;;  %p1564_p2 = scmp.lt.s32.totalorder %s1555_s11, %s1555_s11 }
  0x4c   : > { %p1558_p12 = pnand %p1556_p9, %p1792_p13  ;;  %p1565_p4 = por %p1564_p2, %p1563_p1 }
  0x4e   : > { %p1559_p0 = pneg %p1558_p12 }
  0x50   : > { %p1566_p8 = pnand %p1565_p4, %p1559_p0 }
  0x52   : > { %1569 = shalt.err (!%p1566_p8)
}
  0x53   : > { %1334 = dma.hbm_to_vmem [thread:$0]  (!%p1776_p11), %s2070_s5, 1024, %s253_s16, [#allocation9], %s1679_s13, %s1679_s13, %s1680_s15  }
  0x54   : > { %s1865_s22 = sadd.s32 1, %s1674_s27   ;;  %s32_s17 = sadd.s32 1, %s1670_s26 }
  0x55   : > { %s29_s12 = ssub.s32 %s1674_s27, %s1865_s22  ;;  %p39_p8 = scmp.ne.s32.totalorder %s1670_s26, %s1666_s25 }
  0x56   : > { %p30_p4 = scmp.eq.s32.totalorder %s29_s12, 0  ;;  %p40_p13 = scmp.eq.s32.totalorder %s1674_s27, 0 }
  0x57   : > { %p1346_p6 = scmp.lt.s32.totalorder %s1674_s27, 2  ;;  %p2083_p3 = scmp.eq.s32.totalorder %s1746_s28, 1 }
  0x58   : > { %s1875_s18 = scalar_select %p30_p4, %s1670_s26, %s32_s17  }
  0x59   : > { %p41_p10 = por %p40_p13, %p39_p8  ;;  %p1879_p5 = por %p2083_p3, %p39_p8 }
  0x5a   : > { %s269_s20 = sand.u32 1, %s1670_s26   ;;  %s1147_s21 = sshll.u32 %s1674_s27, 10 }
  0x5b   : > { %s1098_s16 = sshll.u32 %s269_s20, 6  ;;  %s1888_s10 = scalar_lea.hbm %s2065_s0, %s1147_s21 }
  0x5c   : > { %s273_s11 = scalar_lea.vmem [#allocation2], %s1098_s16  ;;  %p1890_p11 = pnand %p1346_p6, %p41_p10 }
  0x5d   : > { %s280_s14 = sshll.u32 %s273_s11, 4  ;;  %s1896_s12 = scalar_lea.sflag [#allocation3], %s269_s20  ;;  %s1894_s14 = int_to_ptr.vmem [resolvable:$true] %s280_s14 }
  0x5e   : > { %s1570_s17 = scalar_lea.hbm %s1888_s10, 1024  ;;  %p1572_p9 = pneg %p1890_p11 }
  0x5f   : > { %p1571_p7 = scmp.ne.s32.totalorder %s1888_s10, %s1570_s17  ;;  %s1575_s23 = scalar_lea.hbm %s2065_s0, 2048 }
  0x60   : > { %p1576_p1 = scmp.lt.u32.totalorder %s1888_s10, %s2065_s0  ;;  %p1577_p2 = scmp.lt.u32.totalorder %s1575_s23, %s1570_s17 }
  0x61   : > { %p1573_p12 = pnand %p1572_p9, %p1571_p7  ;;  %p1579_p8 = scmp.lt.u32.totalorder %s1570_s17, %s1888_s10 }
  0x62   : > { %p1578_p4 = por %p1577_p2, %p1576_p1 }
  0x63   : > { %p1574_p0 = pneg %p1573_p12 }
  0x64   : > { %p1580_p13 = por %p1579_p8, %p1578_p4 }
  0x66   : > { %p1581_p6 = pnand %p1580_p13, %p1574_p0 }
  0x68   : > { %1584 = shalt.err (!%p1581_p6)
}
  0x69   : > { %s1585_s20 = scalar_lea.vmem %s1894_s14, 1024  ;;  %s1681_s21 = smov [#allocation2]  }
  0x6a   : > { %p1586_p10 = scmp.ne.s32.totalorder %s1894_s14, %s1585_s20  ;;  %s1590_s16 = sshll.u32 %s1681_s21, 4  ;;  %s1591_s16 = int_to_ptr.vmem [resolvable:$false] %s1590_s16 }
  0x6b   : > { %s1592_s29 = scalar_lea.vmem %s1591_s16, 2048  ;;  %p1593_p12 = scmp.lt.s32.totalorder %s1894_s14, %s1591_s16 }
  0x6c   : > { %p1588_p3 = pnand %p1586_p10, %p1572_p9  ;;  %p1594_p1 = scmp.lt.s32.totalorder %s1592_s29, %s1585_s20 }
  0x6e   : > { %p1589_p7 = pneg %p1588_p3  ;;  %p1595_p2 = por %p1594_p1, %p1593_p12 }
  0x70   : > { %p1596_p4 = pnand %p1595_p2, %p1589_p7 }
  0x72   : > { %1599 = shalt.err (!%p1596_p4)
}
  0x73   : > { %1338 = dma.hbm_to_vmem [thread:$0]  (!%p1890_p11), %s1888_s10, 1024, %s1894_s14, %s1896_s12, %s1679_s13, %s1679_s13, %s1680_s15  }
  0x74   : > { %p2086_p9 = scmp.ne.s32.totalorder %s2080_s9, 0 }
  0x75   : > { %s1930_s17 = sand.u32 (!%p2086_p9), 1, %s1666_s25   ;;  %p2087_p0 = scmp.ne.s32.totalorder (!%p2086_p9), %s2077_s30, 0 }
  0x76   : > { %292 = sbr.rel (%p2086_p9) target bundleno = 884 (0x374), region = 48  ;;  %s1102_s23 = sshll.u32 (!%p2086_p9), %s1930_s17, 6 }
  0x77   : > { %s295_s11 = scalar_lea.sflag (!%p2086_p9), [#allocation3], %s1930_s17  ;;  %s1934_s20 = scalar_lea.vmem (!%p2086_p9), [#allocation2], %s1102_s23 }
  0x7d   : > { %1645 = dma.done.wait (%p2087_p0), %s295_s11, 1024  }
  0x7e   : > { %1647 = vsyncadd (%p2087_p0), %s295_s11, 4294966272  ;;  %p2088_p11 = scmp.eq.s32.totalorder %s1746_s28, 0 }
  0x80   : > { %1649 = dma.done.wait (%p2088_p11), [#allocation6], 2048   ;;  %p2089_p8 = pmov %p2088_p11 }
  0x82   : > { %1651 = vsyncadd (%p2089_p8), [#allocation6], 4294965248  ;;  %p2090_p13 = pmov %p2089_p8 }
  0x83   : > { %p2091_p6 = pmov %p2089_p8 }
  0x84   : > { %1653 = dma.done.wait (%p2090_p13), [#allocation9], 1024  }
  0x85   : > { %1655 = vsyncadd (%p2091_p6), [#allocation9], 4294966272  ;;  %v1390_v0 = vld [vmem:[#allocation5] sm:$0xff]   ;;  %v1391_v1 = vld [vmem:[#allocation5 + $0x8] sm:$0xff]   ;;  %s1106_s10 = sshll.u32 %s1930_s17, 7  ;;  %s1148_s21 = sshll.u32 %s1746_s28, 11 }
  0x86   : > { %1197 = vmatprep.subr.bf16.mxu0 %v1390_v0  ;;  %v1392_v2 = vld [vmem:[#allocation5 + $0x10] sm:$0xff]   ;;  %v1393_v3 = vld [vmem:[#allocation5 + $0x18] sm:$0xff]   ;;  %v1398_v4 = vld [vmem:[%s1934_s20] sm:$0xff]   ;;  %s1996_s12 = scalar_lea.vmem [#allocation10], %s1106_s10  ;;  %s2016_s11 = scalar_lea.hbm %s2072_s7, %s1148_s21 }
  0x87   : > { %1198 = vmatpush3.bf16.msra.mxu0 %v1390_v0  ;;  %1213 = vmatprep.mubr.bf16.mxu0 %v1398_v4  ;;  %v1394_v5 = vld [vmem:[#allocation5 + $0x20] sm:$0xff]   ;;  %v1395_v6 = vld [vmem:[#allocation5 + $0x28] sm:$0xff]   ;;  %v1396_v9 = vld [vmem:[#allocation5 + $0x30] sm:$0xff]   ;;  %s990_s16 = sshll.u32 %s1996_s12, 4  ;;  %s977_s28 = scalar_lea.sflag [#allocation4], %s1930_s17  ;;  %s2018_s16 = int_to_ptr.vmem [resolvable:$true] %s990_s16 }
  0x88   : > { %1199 = vmatprep.subr.bf16.mxu0 %v1391_v1  ;;  %v1406_v7 = vld [vmem:[#allocation7] sm:$0xff]   ;;  %v1407_v8 = vld [vmem:[#allocation7 + $0x8] sm:$0xff]   ;;  %v1408_v10 = vld [vmem:[#allocation7 + $0x10] sm:$0xff]   ;;  %s1682_s30 = smov [#allocation10]  }
  0x89   : > { %1229 = vmatprep.subr.bf16.mxu1 %v1406_v7  ;;  %v1397_v11 = vld [vmem:[#allocation5 + $0x38] sm:$0xff]   ;;  %v1399_v12 = vld [vmem:[%s1934_s20 + $0x8] sm:$0xff]   ;;  %v1400_v13 = vld [vmem:[%s1934_s20 + $0x10] sm:$0xff]   ;;  %s1604_s9 = sshll.u32 %s1682_s30, 4  ;;  %s1605_s9 = int_to_ptr.vmem [resolvable:$false] %s1604_s9 }
  0x8a   : > { %1230 = vmatpush3.bf16.msra.mxu1 %v1406_v7  ;;  %v1401_v14 = vld [vmem:[%s1934_s20 + $0x18] sm:$0xff]   ;;  %v1402_v15 = vld [vmem:[%s1934_s20 + $0x20] sm:$0xff]   ;;  %v1403_v16 = vld [vmem:[%s1934_s20 + $0x28] sm:$0xff]   ;;  %s1606_s13 = scalar_lea.vmem %s1605_s9, 4096  ;;  %p1607_p12 = scmp.lt.s32.totalorder %s2018_s16, %s1605_s9 }
  0x8b   : > { %1200 = vmatpush3.bf16.msra.mxu0 %v1391_v1  ;;  %1231 = vmatprep.subr.bf16.mxu1 %v1407_v8  ;;  %v1404_v17 = vld [vmem:[%s1934_s20 + $0x30] sm:$0xff]   ;;  %v1405_v18 = vld [vmem:[%s1934_s20 + $0x38] sm:$0xff]   ;;  %v1410_v20 = vld [vmem:[#allocation7 + $0x20] sm:$0xff]   ;;  %s1600_s20 = scalar_lea.vmem %s2018_s16, 2048 }
  0x8c   : > { %1201 = vmatprep.subr.bf16.mxu0 %v1392_v2  ;;  %v1409_v19 = vld [vmem:[#allocation7 + $0x18] sm:$0xff]   ;;  %v1411_v21 = vld [vmem:[#allocation7 + $0x28] sm:$0xff]   ;;  %v1412_v22 = vld [vmem:[#allocation7 + $0x30] sm:$0xff]   ;;  %p1601_p10 = scmp.ne.s32.totalorder %s2018_s16, %s1600_s20  ;;  %p1608_p1 = scmp.lt.s32.totalorder %s1606_s13, %s1600_s20 }
  0x8d   : > { %v1413_v23 = vld [vmem:[#allocation7 + $0x38] sm:$0xff]   ;;  %v1414_v24 = vld [vmem:[#allocation8] sm:$0xff]   ;;  %v1956_v25 = vld [vmem:[#allocation8 + $0x8] sm:$0xff]  }
  0x8e   : > { %1232 = vmatpush3.bf16.msra.mxu1 %v1407_v8  ;;  %v1959_v26 = vld [vmem:[#allocation8 + $0x10] sm:$0xff]   ;;  %v1967_v27 = vld [vmem:[%s2067_s2] ss:$0 sm:$0xff]  ;;  %p1602_p3 = pnand %p1601_p10, %p1879_p5  ;;  %p1609_p2 = por %p1608_p1, %p1607_p12 }
  0x8f   : > { %1202 = vmatpush3.bf16.msra.mxu0 %v1392_v2  ;;  %1233 = vmatprep.subr.bf16.mxu1 %v1408_v10 }
  0x90   : > { %1203 = vmatprep.subr.bf16.mxu0 %v1393_v3  ;;  %p1603_p7 = pneg %p1602_p3 }
  0x92   : > { %1234 = vmatpush3.bf16.msra.mxu1 %v1408_v10  ;;  %p1610_p4 = pnand %p1609_p2, %p1603_p7 }
  0x93   : > { %1204 = vmatpush3.bf16.msra.mxu0 %v1393_v3  ;;  %1235 = vmatprep.subr.bf16.mxu1 %v1409_v19 }
  0x94   : > { %1205 = vmatprep.subr.bf16.mxu0 %v1394_v5 }
  0x96   : > { %1236 = vmatpush3.bf16.msra.mxu1 %v1409_v19 }
  0x97   : > { %1206 = vmatpush3.bf16.msra.mxu0 %v1394_v5  ;;  %1237 = vmatprep.subr.bf16.mxu1 %v1410_v20 }
  0x98   : > { %1207 = vmatprep.subr.bf16.mxu0 %v1395_v6 }
  0x9a   : > { %1238 = vmatpush3.bf16.msra.mxu1 %v1410_v20  ;;  %v1417_v20 = vld [vmem:[#allocation8 + $0x18] sm:$0xff]  }
  0x9b   : > { %1208 = vmatpush3.bf16.msra.mxu0 %v1395_v6  ;;  %1239 = vmatprep.subr.bf16.mxu1 %v1411_v21 }
  0x9c   : > { %1209 = vmatprep.subr.bf16.mxu0 %v1396_v9 }
  0x9e   : > { %1240 = vmatpush3.bf16.msra.mxu1 %v1411_v21  ;;  %v1418_v21 = vld [vmem:[#allocation8 + $0x20] sm:$0xff]  }
  0x9f   : > { %1210 = vmatpush3.bf16.msra.mxu0 %v1396_v9  ;;  %1241 = vmatprep.subr.bf16.mxu1 %v1412_v22 }
  0xa0   : > { %1211 = vmatprep.subr.bf16.mxu0 %v1397_v11 }
  0xa2   : > { %1242 = vmatpush3.bf16.msra.mxu1 %v1412_v22  ;;  %v1419_v22 = vld [vmem:[#allocation8 + $0x28] sm:$0xff]  }
  0xa3   : > { %1212 = vmatpush3.bf16.msra.mxu0 %v1397_v11  ;;  %1243 = vmatprep.subr.bf16.mxu1 %v1413_v23 }
  0xa4   : > { %1261 = vmatprep.subr.bf16.mxu0 %v1414_v24 }
  0xa6   : > { %1214 = vmatmul.mubr.bf16.vlgmr.msra.gmra.mrb[0].mxu0 %v1399_v12  ;;  %1244 = vmatpush3.bf16.msra.mxu1 %v1413_v23  ;;  %v1420_v23 = vld [vmem:[#allocation8 + $0x30] sm:$0xff]  }
  0xa7   : > { %1217 = vmatprep.mubr.bf16.mxu0 %v1400_v13  ;;  %1293 = vmatprep.subr.bf16.mxu1 %v1414_v24 }
  0xa8   : > { %1262 = vmatpush3.bf16.msra.mxu0 %v1414_v24 }
  0xa9   : > { %1263 = vmatprep.subr.bf16.mxu0 %v1956_v25 }
  0xac   : > { %1264 = vmatpush3.bf16.msra.mxu0 %v1956_v25 }
  0xad   : > { %1265 = vmatprep.subr.bf16.mxu0 %v1959_v26 }
  0xae   : > { %1218 = vmatmul.mubr.bf16.gmra.mrb[4].mxu0 %v1401_v14 }
  0xaf   : > { %1221 = vmatprep.mubr.bf16.mxu0 %v1402_v15 }
  0xb0   : > { %1266 = vmatpush3.bf16.msra.mxu0 %v1959_v26 }
  0xb1   : > { %1267 = vmatprep.subr.bf16.mxu0 %v1417_v20 }
  0xb4   : > { %1268 = vmatpush3.bf16.msra.mxu0 %v1417_v20 }
  0xb5   : > { %1269 = vmatprep.subr.bf16.mxu0 %v1418_v21 }
  0xb6   : > { %1222 = vmatmul.mubr.bf16.gmra.mrb[8].mxu0 %v1403_v16 }
  0xb7   : > { %1225 = vmatprep.mubr.bf16.mxu0 %v1404_v17 }
  0xb8   : > { %1270 = vmatpush3.bf16.msra.mxu0 %v1418_v21 }
  0xb9   : > { %1271 = vmatprep.subr.bf16.mxu0 %v1419_v22 }
  0xbc   : > { %1272 = vmatpush3.bf16.msra.mxu0 %v1419_v22 }
  0xbd   : > { %1273 = vmatprep.subr.bf16.mxu0 %v1420_v23 }
  0xbe   : > { %1226 = vmatmul.mubr.bf16.gmra.mrb[12].mxu0 %v1405_v18 }
  0xc0   : > { %1274 = vmatpush3.bf16.msra.mxu0 %v1420_v23 }
 0x179   : > { %v1215_v28 = vpop.f32.mrb[0].mxu0 }
 0x17a   : > { %v522_v29 = vadd.f32 %v1215_v28, %v1967_v27  ;;  %v513_v30 = vpop.f32.mrb[1].mxu0 }
 0x17b   : > { %v514_v31 = vadd.f32 %v1967_v27, %v513_v30  ;;  %v1216_v32 = vpop.f32.mrb[2].mxu0 }
 0x17c   : > { %1422 = vtanh.f32 %v522_v29  ;;  %v525_v33 = vadd.f32 %v1216_v32, %v1967_v27  ;;  %v516_v34 = vpop.f32.mrb[3].mxu0 }
 0x17d   : > { %1424 = vtanh.f32 %v514_v31  ;;  %v517_v35 = vadd.f32 %v1967_v27, %v516_v34 }
 0x17e   : > { %1426 = vtanh.f32 %v525_v33 }
 0x17f   : > { %1428 = vtanh.f32 %v517_v35 }
 0x181   : > { %v1219_v36 = vpop.f32.mrb[4].mxu0 }
 0x182   : > { %v538_v37 = vadd.f32 %v1219_v36, %v1967_v27  ;;  %v529_v38 = vpop.f32.mrb[5].mxu0 }
 0x183   : > { %v530_v39 = vadd.f32 %v1967_v27, %v529_v38  ;;  %v1220_v40 = vpop.f32.mrb[6].mxu0 }
 0x184   : > { %1430 = vtanh.f32 %v538_v37  ;;  %v541_v41 = vadd.f32 %v1220_v40, %v1967_v27  ;;  %v532_v42 = vpop.f32.mrb[7].mxu0 }
 0x185   : > { %1432 = vtanh.f32 %v530_v39  ;;  %v533_v43 = vadd.f32 %v1967_v27, %v532_v42 }
 0x186   : > { %v1423_v44 = vpop.eup %1422  ;;  %1434 = vtanh.f32 %v541_v41 }
 0x187   : > { %v1425_v45 = vpop.eup %1424  ;;  %1436 = vtanh.f32 %v533_v43 }
 0x188   : > { %v1427_v46 = vpop.eup %1426 }
 0x189   : > { %v1429_v47 = vpop.eup %1428  ;;  %v1223_v48 = vpop.f32.mrb[8].mxu0  ;;  %v593_v49 = vpack.c.bf16 %v1427_v46, %v1423_v44 }
 0x18a   : > { %v554_v50 = vadd.f32 %v1223_v48, %v1967_v27  ;;  %v545_v51 = vpop.f32.mrb[9].mxu0  ;;  %v592_v52 = vpack.c.bf16 %v1429_v47, %v1425_v45 }
 0x18b   : > { %v546_v53 = vadd.f32 %v1967_v27, %v545_v51  ;;  %v1224_v54 = vpop.f32.mrb[10].mxu0 }
 0x18c   : > { %1438 = vtanh.f32 %v554_v50  ;;  %v557_v55 = vadd.f32 %v1224_v54, %v1967_v27  ;;  %v548_v56 = vpop.f32.mrb[11].mxu0  ;;  %1245 = vmatprep.mubr.bf16.mxu1 %v592_v52 }
 0x18d   : > { %1440 = vtanh.f32 %v546_v53  ;;  %v549_v57 = vadd.f32 %v1967_v27, %v548_v56  ;;  %1246 = vmatmul.mubr.bf16.vlgmr.msra.gmra.mrb[0].mxu1 %v593_v49 }
 0x18e   : > { %v1431_v58 = vpop.eup %1430  ;;  %1442 = vtanh.f32 %v557_v55  ;;  %1301 = vmatpush3.bf16.msra.mxu1 %v1414_v24  ;;  %v1421_v24 = vld [vmem:[#allocation8 + $0x38] sm:$0xff]  }
 0x18f   : > { %v1433_v59 = vpop.eup %1432  ;;  %1444 = vtanh.f32 %v549_v57  ;;  %1294 = vmatprep.subr.bf16.mxu1 %v1956_v25  ;;  %1275 = vmatprep.subr.bf16.mxu0 %v1421_v24 }
 0x190   : > { %v1435_v60 = vpop.eup %1434  ;;  %1276 = vmatpush3.bf16.msra.mxu0 %v1421_v24 }
 0x191   : > { %v1437_v61 = vpop.eup %1436  ;;  %v1227_v62 = vpop.f32.mrb[12].mxu0  ;;  %v595_v63 = vpack.c.bf16 %v1435_v60, %v1431_v58 }
 0x192   : > { %v570_v0 = vadd.f32 %v1227_v62, %v1967_v27  ;;  %v561_v1 = vpop.f32.mrb[13].mxu0  ;;  %v594_v2 = vpack.c.bf16 %v1437_v61, %v1433_v59  ;;  %1302 = vmatpush3.bf16.msra.mxu1 %v1956_v25  ;;  %v1124_v25 = vld [vmem:[%s2069_s4] ss:$0 sm:$0xff] }
 0x193   : > { %v562_v3 = vadd.f32 %v1967_v27, %v561_v1  ;;  %v1228_v4 = vpop.f32.mrb[14].mxu0  ;;  %1295 = vmatprep.subr.bf16.mxu1 %v1959_v26 }
 0x194   : > { %1446 = vtanh.f32 %v570_v0  ;;  %v573_v5 = vadd.f32 %v1228_v4, %v1967_v27  ;;  %v564_v6 = vpop.f32.mrb[15].mxu0  ;;  %1249 = vmatprep.mubr.bf16.mxu1 %v594_v2 }
 0x195   : > { %1448 = vtanh.f32 %v562_v3  ;;  %v565_v7 = vadd.f32 %v1967_v27, %v564_v6  ;;  %1250 = vmatmul.mubr.bf16.gmra.mrb[4].mxu1 %v595_v63 }
 0x196   : > { %v1439_v8 = vpop.eup %1438  ;;  %1450 = vtanh.f32 %v573_v5  ;;  %1303 = vmatpush3.bf16.msra.mxu1 %v1959_v26 }
 0x197   : > { %v1441_v9 = vpop.eup %1440  ;;  %1452 = vtanh.f32 %v565_v7  ;;  %1296 = vmatprep.subr.bf16.mxu1 %v1417_v20 }
 0x198   : > { %v1443_v10 = vpop.eup %1442 }
 0x199   : > { %v1445_v11 = vpop.eup %1444  ;;  %v597_v12 = vpack.c.bf16 %v1443_v10, %v1439_v8 }
 0x19a   : > { %v596_v13 = vpack.c.bf16 %v1445_v11, %v1441_v9  ;;  %1304 = vmatpush3.bf16.msra.mxu1 %v1417_v20 }
 0x19b   : > { %1297 = vmatprep.subr.bf16.mxu1 %v1418_v21 }
 0x19c   : > { %1253 = vmatprep.mubr.bf16.mxu1 %v596_v13 }
 0x19d   : > { %1254 = vmatmul.mubr.bf16.gmra.mrb[8].mxu1 %v597_v12 }
 0x19e   : > { %v1447_v14 = vpop.eup %1446  ;;  %1305 = vmatpush3.bf16.msra.mxu1 %v1418_v21 }
 0x19f   : > { %v1449_v15 = vpop.eup %1448  ;;  %1298 = vmatprep.subr.bf16.mxu1 %v1419_v22 }
 0x1a0   : > { %v1451_v16 = vpop.eup %1450 }
 0x1a1   : > { %v1453_v17 = vpop.eup %1452  ;;  %v599_v18 = vpack.c.bf16 %v1451_v16, %v1447_v14 }
 0x1a2   : > { %v598_v19 = vpack.c.bf16 %v1453_v17, %v1449_v15  ;;  %1306 = vmatpush3.bf16.msra.mxu1 %v1419_v22 }
 0x1a3   : > { %1299 = vmatprep.subr.bf16.mxu1 %v1420_v23 }
 0x1a4   : > { %1257 = vmatprep.mubr.bf16.mxu1 %v598_v19 }
 0x1a5   : > { %1258 = vmatmul.mubr.bf16.gmra.mrb[12].mxu1 %v599_v18  ;;  %v1133_v18 = vld [vmem:[%s2071_s6] ss:$0 sm:$0xff] }
 0x1a6   : > { %1307 = vmatpush3.bf16.msra.mxu1 %v1420_v23 }
 0x1a7   : > { %1300 = vmatprep.subr.bf16.mxu1 %v1421_v24 }
 0x1aa   : > { %1308 = vmatpush3.bf16.msra.mxu1 %v1421_v24 }
 0x260   : > { %v1247_v26 = vpop.f32.mrb[0].mxu1 }
 0x261   : > { %v714_v27 = vadd.f32 %v1247_v26, %v1124_v25  ;;  %v705_v28 = vpop.f32.mrb[1].mxu1 }
 0x262   : > { %v706_v29 = vadd.f32 %v1124_v25, %v705_v28  ;;  %v1248_v30 = vpop.f32.mrb[2].mxu1 }
 0x263   : > { %1454 = vtanh.f32 %v714_v27  ;;  %v717_v31 = vadd.f32 %v1248_v30, %v1124_v25  ;;  %v708_v32 = vpop.f32.mrb[3].mxu1 }
 0x264   : > { %1456 = vtanh.f32 %v706_v29  ;;  %v709_v33 = vadd.f32 %v1124_v25, %v708_v32 }
 0x265   : > { %1458 = vtanh.f32 %v717_v31 }
 0x266   : > { %1460 = vtanh.f32 %v709_v33 }
 0x268   : > { %v1251_v34 = vpop.f32.mrb[4].mxu1 }
 0x269   : > { %v730_v35 = vadd.f32 %v1251_v34, %v1124_v25  ;;  %v721_v36 = vpop.f32.mrb[5].mxu1 }
 0x26a   : > { %v722_v37 = vadd.f32 %v1124_v25, %v721_v36  ;;  %v1252_v38 = vpop.f32.mrb[6].mxu1 }
 0x26b   : > { %1462 = vtanh.f32 %v730_v35  ;;  %v733_v39 = vadd.f32 %v1252_v38, %v1124_v25  ;;  %v724_v40 = vpop.f32.mrb[7].mxu1 }
 0x26c   : > { %1464 = vtanh.f32 %v722_v37  ;;  %v725_v41 = vadd.f32 %v1124_v25, %v724_v40 }
 0x26d   : > { %v1455_v42 = vpop.eup %1454  ;;  %1466 = vtanh.f32 %v733_v39 }
 0x26e   : > { %v1457_v43 = vpop.eup %1456  ;;  %1468 = vtanh.f32 %v725_v41 }
 0x26f   : > { %v1459_v44 = vpop.eup %1458 }
 0x270   : > { %v1461_v45 = vpop.eup %1460  ;;  %v1255_v46 = vpop.f32.mrb[8].mxu1  ;;  %v785_v47 = vpack.c.bf16 %v1459_v44, %v1455_v42 }
 0x271   : > { %v746_v48 = vadd.f32 %v1255_v46, %v1124_v25  ;;  %v737_v49 = vpop.f32.mrb[9].mxu1  ;;  %v784_v50 = vpack.c.bf16 %v1461_v45, %v1457_v43 }
 0x272   : > { %v738_v51 = vadd.f32 %v1124_v25, %v737_v49  ;;  %v1256_v52 = vpop.f32.mrb[10].mxu1 }
 0x273   : > { %1470 = vtanh.f32 %v746_v48  ;;  %v749_v53 = vadd.f32 %v1256_v52, %v1124_v25  ;;  %v740_v54 = vpop.f32.mrb[11].mxu1  ;;  %1277 = vmatprep.mubr.bf16.mxu0 %v784_v50 }
 0x274   : > { %1472 = vtanh.f32 %v738_v51  ;;  %v741_v55 = vadd.f32 %v1124_v25, %v740_v54  ;;  %1278 = vmatmul.mubr.bf16.vlgmr.msra.gmra.mrb[16].mxu0 %v785_v47 }
 0x275   : > { %v1463_v56 = vpop.eup %1462  ;;  %1474 = vtanh.f32 %v749_v53 }
 0x276   : > { %v1465_v57 = vpop.eup %1464  ;;  %1476 = vtanh.f32 %v741_v55 }
 0x277   : > { %v1467_v58 = vpop.eup %1466 }
 0x278   : > { %v1469_v59 = vpop.eup %1468  ;;  %v1259_v60 = vpop.f32.mrb[12].mxu1  ;;  %v787_v61 = vpack.c.bf16 %v1467_v58, %v1463_v56 }
 0x279   : > { %v762_v62 = vadd.f32 %v1259_v60, %v1124_v25  ;;  %v753_v63 = vpop.f32.mrb[13].mxu1  ;;  %v786_v0 = vpack.c.bf16 %v1469_v59, %v1465_v57 }
 0x27a   : > { %v754_v1 = vadd.f32 %v1124_v25, %v753_v63  ;;  %v1260_v2 = vpop.f32.mrb[14].mxu1 }
 0x27b   : > { %1478 = vtanh.f32 %v762_v62  ;;  %v765_v3 = vadd.f32 %v1260_v2, %v1124_v25  ;;  %v756_v4 = vpop.f32.mrb[15].mxu1  ;;  %1281 = vmatprep.mubr.bf16.mxu0 %v786_v0 }
 0x27c   : > { %1480 = vtanh.f32 %v754_v1  ;;  %v757_v5 = vadd.f32 %v1124_v25, %v756_v4  ;;  %1282 = vmatmul.mubr.bf16.gmra.mrb[20].mxu0 %v787_v61 }
 0x27d   : > { %v1471_v6 = vpop.eup %1470  ;;  %1482 = vtanh.f32 %v765_v3 }
 0x27e   : > { %v1473_v7 = vpop.eup %1472  ;;  %1484 = vtanh.f32 %v757_v5 }
 0x27f   : > { %v1475_v8 = vpop.eup %1474 }
 0x280   : > { %v1477_v9 = vpop.eup %1476  ;;  %v789_v10 = vpack.c.bf16 %v1475_v8, %v1471_v6 }
 0x281   : > { %v788_v11 = vpack.c.bf16 %v1477_v9, %v1473_v7 }
 0x283   : > { %1285 = vmatprep.mubr.bf16.mxu1 %v788_v11 }
 0x284   : > { %1286 = vmatmul.mubr.bf16.vlgmr.msra.gmra.mrb[16].mxu1 %v789_v10 }
 0x285   : > { %v1479_v12 = vpop.eup %1478 }
 0x286   : > { %v1481_v13 = vpop.eup %1480 }
 0x287   : > { %v1483_v14 = vpop.eup %1482 }
 0x288   : > { %v1485_v15 = vpop.eup %1484  ;;  %v791_v16 = vpack.c.bf16 %v1483_v14, %v1479_v12 }
 0x289   : > { %v790_v17 = vpack.c.bf16 %v1485_v15, %v1481_v13 }
 0x28b   : > { %1289 = vmatprep.mubr.bf16.mxu1 %v790_v17 }
 0x28c   : > { %1290 = vmatmul.mubr.bf16.gmra.mrb[20].mxu1 %v791_v16 }
 0x347   : > { %v1279_v19 = vpop.f32.mrb[16].mxu0 }
 0x348   : > { %v906_v20 = vadd.f32 %v1279_v19, %v1133_v18  ;;  %v897_v21 = vpop.f32.mrb[17].mxu0 }
 0x349   : > { %v898_v22 = vadd.f32 %v1133_v18, %v897_v21  ;;  %v1280_v23 = vpop.f32.mrb[18].mxu0 }
 0x34a   : > { %962 = vst [vmem:[%s1996_s12 + $0x10] sm:$0xff] %v906_v20  ;;  %v909_v24 = vadd.f32 %v1280_v23, %v1133_v18  ;;  %v900_v25 = vpop.f32.mrb[19].mxu0 }
 0x34b   : > { %960 = vst [vmem:[%s1996_s12] sm:$0xff] %v898_v22  ;;  %v901_v26 = vadd.f32 %v1133_v18, %v900_v25 }
 0x34c   : > { %963 = vst [vmem:[%s1996_s12 + $0x18] sm:$0xff] %v909_v24 }
 0x34d   : > { %961 = vst [vmem:[%s1996_s12 + $0x8] sm:$0xff] %v901_v26 }
 0x34f   : > { %v1283_v27 = vpop.f32.mrb[20].mxu0 }
 0x350   : > { %v922_v28 = vadd.f32 %v1283_v27, %v1133_v18  ;;  %v913_v29 = vpop.f32.mrb[21].mxu0 }
 0x351   : > { %v914_v30 = vadd.f32 %v1133_v18, %v913_v29  ;;  %v1284_v31 = vpop.f32.mrb[22].mxu0 }
 0x352   : > { %966 = vst [vmem:[%s1996_s12 + $0x30] sm:$0xff] %v922_v28  ;;  %v925_v32 = vadd.f32 %v1284_v31, %v1133_v18  ;;  %v916_v33 = vpop.f32.mrb[23].mxu0 }
 0x353   : > { %964 = vst [vmem:[%s1996_s12 + $0x20] sm:$0xff] %v914_v30  ;;  %v917_v34 = vadd.f32 %v1133_v18, %v916_v33 }
 0x354   : > { %967 = vst [vmem:[%s1996_s12 + $0x38] sm:$0xff] %v925_v32 }
 0x355   : > { %965 = vst [vmem:[%s1996_s12 + $0x28] sm:$0xff] %v917_v34 }
 0x357   : > { %v1287_v35 = vpop.f32.mrb[16].mxu1 }
 0x358   : > { %v938_v36 = vadd.f32 %v1287_v35, %v1133_v18  ;;  %v929_v37 = vpop.f32.mrb[17].mxu1 }
 0x359   : > { %v930_v38 = vadd.f32 %v1133_v18, %v929_v37  ;;  %v1288_v39 = vpop.f32.mrb[18].mxu1 }
 0x35a   : > { %970 = vst [vmem:[%s1996_s12 + $0x50] sm:$0xff] %v938_v36  ;;  %v941_v40 = vadd.f32 %v1288_v39, %v1133_v18  ;;  %v932_v41 = vpop.f32.mrb[19].mxu1 }
 0x35b   : > { %968 = vst [vmem:[%s1996_s12 + $0x40] sm:$0xff] %v930_v38  ;;  %v933_v42 = vadd.f32 %v1133_v18, %v932_v41 }
 0x35c   : > { %971 = vst [vmem:[%s1996_s12 + $0x58] sm:$0xff] %v941_v40 }
 0x35d   : > { %969 = vst [vmem:[%s1996_s12 + $0x48] sm:$0xff] %v933_v42 }
 0x35f   : > { %v1291_v43 = vpop.f32.mrb[20].mxu1 }
 0x360   : > { %v954_v44 = vadd.f32 %v1291_v43, %v1133_v18  ;;  %v945_v45 = vpop.f32.mrb[21].mxu1 }
 0x361   : > { %v946_v46 = vadd.f32 %v1133_v18, %v945_v45  ;;  %v1292_v47 = vpop.f32.mrb[22].mxu1 }
 0x362   : > { %974 = vst [vmem:[%s1996_s12 + $0x70] sm:$0xff] %v954_v44  ;;  %v957_v48 = vadd.f32 %v1292_v47, %v1133_v18  ;;  %v948_v49 = vpop.f32.mrb[23].mxu1 }
 0x363   : > { %972 = vst [vmem:[%s1996_s12 + $0x60] sm:$0xff] %v946_v46  ;;  %v949_v50 = vadd.f32 %v1133_v18, %v948_v49 }
 0x364   : > { %975 = vst [vmem:[%s1996_s12 + $0x78] sm:$0xff] %v957_v48 }
 0x365   : > { %973 = vst [vmem:[%s1996_s12 + $0x68] sm:$0xff] %v949_v50 }
 0x366   : > { %1613 = shalt.err (!%p1610_p4)
}
 0x367   : > { %s1614_s15 = scalar_lea.hbm %s2016_s11, 2048  ;;  %s1618_s8 = scalar_lea.hbm %s2072_s7, 4096 }
 0x368   : > { %p1615_p9 = scmp.ne.s32.totalorder %s2016_s11, %s1614_s15  ;;  %p1619_p8 = scmp.lt.u32.totalorder %s2016_s11, %s2072_s7 }
 0x369   : > { %p1620_p13 = scmp.lt.u32.totalorder %s1618_s8, %s1614_s15  ;;  %p1622_p10 = scmp.lt.u32.totalorder %s1614_s15, %s2016_s11 }
 0x36a   : > { %p1616_p0 = pnand %p1615_p9, %p1879_p5 }
 0x36b   : > { %p1621_p6 = por %p1620_p13, %p1619_p8 }
 0x36c   : > { %p1617_p11 = pneg %p1616_p0 }
 0x36d   : > { %p1623_p3 = por %p1622_p10, %p1621_p6 }
 0x36f   : > { %p1624_p7 = pnand %p1623_p3, %p1617_p11 }
 0x371   : > { %1627 = shalt.err (!%p1624_p7)
}
 0x372   : > { %s1683_s29 = smov 128   ;;  %s1684_s23 = smov 8  }
 0x373   : > { %1323 = dma.vmem_to_hbm [thread:$0]  (%p1879_p5), %s2018_s16, 2048, %s2016_s11, %s977_s28, %s1683_s29, %s1683_s29, %s1684_s23  }
 0x374 PF: > { %s2092_s20 = sld [smem:[#allocation15_spill]]  ;;  %s1005_s30 = sand.u32 1, %s1662_s24  }
 0x375   : > { %p2094_p1 = scmp.ge.s32.totalorder %s1674_s27, 2  ;;  %s1006_s9 = scalar_lea.sflag [#allocation4], %s1005_s30 }
 0x37a   : > { %p2093_p12 = scmp.ne.s32.totalorder %s2092_s20, 0 }
 0x37c   : > { %p1340_p2 = pnand %p2094_p1, %p2093_p12 }
 0x37e   : > { %1657 = dma.done.wait (!%p1340_p2), %s1006_s9, 2048  }
 0x37f   : > { %1659 = vsyncadd (!%p1340_p2), %s1006_s9, 4294965248  ;;  %p22_p4 = scmp.ge.s32.totalorder %s1865_s22, 4   ;;  %s2095_s24 = smov %s1666_s25 }
 0x380   : > { %s2096_s25 = smov %s1670_s26  ;;  %s2097_s26 = smov %s1875_s18 }
 0x381   : > { %s2098_s27 = smov %s1865_s22  ;;  %24 = sbr.rel (!%p22_p4) target bundleno = 7 (0x7), region = 105 }
 0x388   :  { %1011 = vsyncpa [#allocation3], 1 }
 0x389   :  { %1013 = vsyncpa [#allocation3 + $0x1], 1 }
 0x38a   :  { %1014 = vsyncpa [#allocation6], 1 }
 0x38b   :  { %1015 = vsyncpa [#allocation9], 1 }
 0x38c   :  { %1016 = vsyncpa [#allocation4], 1 }
 0x38d   :  { %1018 = vsyncpa [#allocation4 + $0x1], 1 }

</bundles_post_ra>
